<compile_context>
chip_gen: v7x
topology: tpu7x:2x2x1
jax: 0.10.0
libtpu: 0.0.40
codegen_flags: <defaults>
</compile_context>

<pallas_src>
import jax
import jax.numpy as jnp
from jax.experimental import pallas as pl
from jax.experimental.pallas import tpu as pltpu

# ----------------------------- small synthetic sizes -----------------------------
B = 2              # batch size / number of prompts
NUM_ID = 2         # reference (id) images per prompt
IMG = 64           # pixel_values spatial size (real SDXL: 512/1024)
PATCH = 8          # VAE stand-in downsample factor (SDXL VAE: 8)
LAT_C = 4          # latent channels
LAT_H = IMG // PATCH
ID_IMG = 32        # id image spatial size (real: 224)
V_DIM = 128        # CLIP-vision pooled dim stand-in (real: 1024)
P1 = 128           # visual_projection out dim (real: 768)
P2 = 128           # visual_projection_2 / pooled text dim (real: 1280)
E = P1 + P2        # prompt-embed dim (real: 2048)
S = 16             # text sequence length (real: 77)
T_TRAIN = 1000     # DDPM num_train_timesteps
VAE_SCALE = 0.13025


# ====================== kernel 1: VAE + add_noise + UNet (fused) =================
def _latent_path_kernel(xT_ref, nT_ref, sa_ref, sb_ref,
                        vae_wT_ref, vae_bT_ref, unet_wT_ref, unet_bT_ref, o_ref):
    # "VAE encode" stand-in: patch projection, computed transposed so the big
    # dimension M = B*LAT_H*LAT_H (=128) sits on the lane axis -> lane-dense I/O.
    lat = jnp.dot(vae_wT_ref[...], xT_ref[...],
                  preferred_element_type=jnp.float32) + vae_bT_ref[...]      # (C, M)
    # DDPM add_noise with the VAE scaling folded in (per-column scale rows).
    noisy = sa_ref[...] * (lat * VAE_SCALE) + sb_ref[...] * nT_ref[...]      # (C, M)
    # UNet stand-in: 1x1 channel projection as 4 VPU scaled-adds (a 4x4 matmul
    # would leave the MXU ~idle; this keeps it entirely on the VPU).
    acc = unet_bT_ref[...]                                                   # (C, 1)
    uw = unet_wT_ref[...]                                                    # (C, C)
    for k in range(LAT_C):
        acc = acc + uw[:, k:k + 1] * noisy[k:k + 1, :]
    o_ref[...] = acc.astype(o_ref.dtype)


def pallas_latent_path(xT, noiseT, sa_row, sb_row, params):
    C, M = noiseT.shape
    return pl.pallas_call(
        _latent_path_kernel,
        out_shape=jax.ShapeDtypeStruct((C, M), jnp.float32),
    )(xT.astype(jnp.float32), noiseT.astype(jnp.float32),
      sa_row.astype(jnp.float32), sb_row.astype(jnp.float32),
      params["vae_w"].T, params["vae_b"].reshape(LAT_C, 1),
      params["unet_w"].T, params["unet_b"].reshape(LAT_C, 1))


# ==================== kernel 2: id encoder (vision + merged proj) ================
def _id_embed_kernel(pix_ref, vis_w_ref, vis_b_ref, proj_w_ref, o_ref):
    # TODO(synk): real model uses a pretrained CLIP ViT vision tower; linear stand-in.
    shared = jnp.dot(pix_ref[...], vis_w_ref[...],
                     preferred_element_type=jnp.float32) + vis_b_ref[...]    # (N, V)
    # visual_projection and visual_projection_2 merged into one (V_DIM, E) matmul.
    o_ref[...] = jnp.dot(shared, proj_w_ref[...],
                         preferred_element_type=jnp.float32).astype(o_ref.dtype)


def pallas_id_embed(flat_pix, params):
    N = flat_pix.shape[0]
    return pl.pallas_call(
        _id_embed_kernel,
        out_shape=jax.ShapeDtypeStruct((N, E), jnp.float32),
    )(flat_pix.astype(jnp.float32), params["vis_w"],
      params["vis_b"].reshape(1, V_DIM), params["proj_w"])


# ================= kernel 3: FuseModule + in-kernel masked scatter ===============
def _layernorm(x, g, b, eps=1e-5):
    mu = jnp.mean(x, axis=-1, keepdims=True)
    var = jnp.mean(jnp.square(x - mu), axis=-1, keepdims=True)
    return (x - mu) * jax.lax.rsqrt(var + eps) * g + b


def _fuse_scatter_kernel(ci_ref, pt_ref, id_ref,
                         ln0g, ln0b, w1a, b1a, w1b, b1b,
                         ln1g, ln1b, w2a, b2a, w2b, b2b,
                         lnfg, lnfb, o_ref):
    bi = pl.program_id(0)
    ci = ci_ref[bi]                                   # scalar-prefetched trigger index
    prompt_blk = pt_ref[0]                            # (S, E)
    id_emb = id_ref[0]                                # (NUM_ID, E)

    # Gather the NUM_ID class-token rows (contiguous run starting at ci) via a
    # one-hot matmul: robust lowering, no dynamic sublane slicing.
    # TODO(synk): assumes the trigger tokens form a contiguous run of exactly
    # NUM_ID rows, matching how encode_prompt_with_trigger_word builds the mask.
    cols = jax.lax.broadcasted_iota(jnp.int32, (NUM_ID, S), 1)
    rows = jax.lax.broadcasted_iota(jnp.int32, (NUM_ID, S), 0)
    gather = (cols == ci + rows).astype(jnp.float32)                          # (NUM_ID, S)
    image_tok = jnp.dot(gather, prompt_blk, preferred_element_type=jnp.float32)

    # FuseModule.fuse_fn: MLP1 (no residual) + prompt residual, MLP2 (residual), LN.
    x = jnp.concatenate([image_tok, id_emb], axis=-1)                         # (NUM_ID, 2E)
    h = _layernorm(x, ln0g[...], ln0b[...])
    h = jax.nn.gelu(jnp.dot(h, w1a[...], preferred_element_type=jnp.float32)
                    + b1a[...], approximate=False)
    h = jnp.dot(h, w1b[...], preferred_element_type=jnp.float32) + b1b[...]
    x2 = h + image_tok
    h2 = _layernorm(x2, ln1g[...], ln1b[...])
    h2 = jax.nn.gelu(jnp.dot(h2, w2a[...], preferred_element_type=jnp.float32)
                     + b2a[...], approximate=False)
    h2 = jnp.dot(h2, w2b[...], preferred_element_type=jnp.float32) + b2b[...]
    x3 = h2 + x2
    fused = _layernorm(x3, lnfg[...], lnfb[...])                              # (NUM_ID, E)

    # masked_scatter_: place fused rows back at [ci, ci+NUM_ID), pass through the
    # rest of the prompt block — all inside this kernel (no separate scatter call).
    scat = (jax.lax.broadcasted_iota(jnp.int32, (S, NUM_ID), 0)
            == ci + jax.lax.broadcasted_iota(jnp.int32, (S, NUM_ID), 1)
            ).astype(jnp.float32)                                             # (S, NUM_ID)
    fused_full = jnp.dot(scat, fused, preferred_element_type=jnp.float32)     # (S, E)
    pos = jax.lax.broadcasted_iota(jnp.int32, (S, 1), 0)
    sel = (pos >= ci) & (pos < ci + NUM_ID)
    o_ref[0] = jnp.where(sel, fused_full, prompt_blk).astype(o_ref.dtype)


def pallas_fuse_scatter(class_token_idx, prompt_embeds, id_embeds, fp):
    Bq = prompt_embeds.shape[0]
    weights = (fp["ln0_g"], fp["ln0_b"], fp["w1a"], fp["b1a"], fp["w1b"], fp["b1b"],
               fp["ln1_g"], fp["ln1_b"], fp["w2a"], fp["b2a"], fp["w2b"], fp["b2b"],
               fp["lnf_g"], fp["lnf_b"])

    def full_block(shape):
        # constant block index -> Pallas keeps the weight resident, DMA'd once
        return pl.BlockSpec(shape, lambda b, ci: (0,) * len(shape))

    grid_spec = pltpu.PrefetchScalarGridSpec(
        num_scalar_prefetch=1,
        grid=(Bq,),
        in_specs=[
            pl.BlockSpec((1, S, E), lambda b, ci: (b, 0, 0)),        # prompt_embeds
            pl.BlockSpec((1, NUM_ID, E), lambda b, ci: (b, 0, 0)),   # id_embeds
        ] + [full_block(w.shape) for w in weights],
        out_specs=pl.BlockSpec((1, S, E), lambda b, ci: (b, 0, 0)),
    )
    return pl.pallas_call(
        _fuse_scatter_kernel,
        out_shape=jax.ShapeDtypeStruct((Bq, S, E), jnp.float32),
        grid_spec=grid_spec,
        compiler_params=pltpu.CompilerParams(
            dimension_semantics=("parallel",)),   # shards prompts across v7x's 2 TCs
    )(class_token_idx.astype(jnp.int32),
      prompt_embeds.astype(jnp.float32), id_embeds.astype(jnp.float32), *weights)


# ============================== parameter construction ===========================
def init_params():
    k = jax.random.PRNGKey(42)
    ks = jax.random.split(k, 16)
    s = 0.02
    one = lambda n: jnp.ones((1, n), jnp.float32)
    zero = lambda n: jnp.zeros((1, n), jnp.float32)
    proj1_w = s * jax.random.normal(ks[2], (V_DIM, P1), jnp.float32)
    proj2_w = s * jax.random.normal(ks[3], (V_DIM, P2), jnp.float32)
    params = {
        # VAE-encoder stand-in (patchify + linear)
        "vae_w": s * jax.random.normal(ks[0], (3 * PATCH * PATCH, LAT_C), jnp.float32),
        "vae_b": jnp.zeros((LAT_C,), jnp.float32),
        # CLIP vision tower stand-in (flatten + linear -> pooled feature)
        "vis_w": s * jax.random.normal(ks[1], (3 * ID_IMG * ID_IMG, V_DIM), jnp.float32),
        "vis_b": jnp.zeros((V_DIM,), jnp.float32),
        # id_encoder trainable projections (bias=False), merged into one weight:
        # concat([x@W1, x@W2], -1) == x @ concat([W1, W2], -1)
        "proj_w": jnp.concatenate([proj1_w, proj2_w], axis=-1),          # (V_DIM, E)
        # FuseModule
        "fuse": {
            "ln0_g": one(2 * E), "ln0_b": zero(2 * E),
            "w1a": s * jax.random.normal(ks[4], (2 * E, E), jnp.float32),
            "b1a": zero(E),
            "w1b": s * jax.random.normal(ks[5], (E, E), jnp.float32),
            "b1b": zero(E),
            "ln1_g": one(E), "ln1_b": zero(E),
            "w2a": s * jax.random.normal(ks[6], (E, E), jnp.float32),
            "b2a": zero(E),
            "w2b": s * jax.random.normal(ks[7], (E, E), jnp.float32),
            "b2b": zero(E),
            "lnf_g": one(E), "lnf_b": zero(E),
        },
        # UNet stand-in (1x1 channel projection)
        "unet_w": s * jax.random.normal(ks[8], (LAT_C, LAT_C), jnp.float32),
        "unet_b": jnp.zeros((LAT_C,), jnp.float32),
    }
    return params


def ddpm_alphas_cumprod():
    # SDXL DDPMScheduler: scaled_linear betas in [0.00085, 0.012]
    betas = jnp.linspace(0.00085 ** 0.5, 0.012 ** 0.5, T_TRAIN, dtype=jnp.float32) ** 2
    alphas = 1.0 - betas
    return jnp.cumprod(alphas)


# ================================ forward pass ====================================
def compute_time_ids(original_size, crop_top_left):
    target_size = [float(LAT_H * PATCH), float(LAT_H * PATCH)]
    vals = list(map(float, original_size)) + list(map(float, crop_top_left)) + target_size
    return jnp.asarray([vals], dtype=jnp.float32)


def photomaker_forward(params, pixel_values, id_pixel_values, class_token_indices,
                       original_sizes, crop_top_lefts, key):
    Bq = pixel_values.shape[0]
    M = Bq * LAT_H * LAT_H

    # ----- VAE encode + add_noise + UNet stand-ins: ONE fused Pallas call -----
    # TODO(synk): pretrained AutoencoderKL (+latent_dist.sample) and
    # UNet2DConditionModel (+LoRA adapters) are not translatable; patchify+linear
    # and 1x1 channel projection stand-ins are used instead.
    x = pixel_values.reshape(Bq, 3, LAT_H, PATCH, LAT_H, PATCH)
    x = x.transpose(0, 2, 4, 1, 3, 5).reshape(M, 3 * PATCH * PATCH)
    xT = x.T                                                       # (3*P*P, M)

    k_noise, k_t, k_txt = jax.random.split(key, 3)
    noise = jax.random.normal(k_noise, (Bq, LAT_C, LAT_H, LAT_H), jnp.float32)
    timesteps = jax.random.randint(k_t, (Bq,), 0, T_TRAIN)
    acp_t = jnp.take(ddpm_alphas_cumprod(), timesteps)
    sa_row = jnp.repeat(jnp.sqrt(acp_t), LAT_H * LAT_H)[None, :]          # (1, M)
    sb_row = jnp.repeat(jnp.sqrt(1.0 - acp_t), LAT_H * LAT_H)[None, :]    # (1, M)
    noiseT = noise.transpose(1, 0, 2, 3).reshape(LAT_C, M)

    predT = pallas_latent_path(xT, noiseT, sa_row, sb_row, params)        # (C, M)
    model_pred = predT.reshape(LAT_C, Bq, LAT_H, LAT_H).transpose(1, 0, 2, 3)

    # ----- add_time_ids -----
    add_time_ids = jnp.concatenate(
        [compute_time_ids(s_, c_) for s_, c_ in zip(original_sizes, crop_top_lefts)],
        axis=0)                                                            # (B, 6)

    # ----- batched synthetic text encodings (do_cfg=False path) -----
    # TODO(synk): tokenizers + frozen CLIP text encoders replaced by deterministic
    # synthetic prompt embeddings of matching shape/dtype.
    ke, kp = jax.random.split(k_txt)
    prompt_embeds = 0.02 * jax.random.normal(ke, (Bq, S, E), jnp.float32)
    pooled_prompt_embeds = 0.02 * jax.random.normal(kp, (Bq, P2), jnp.float32)

    # ----- id_encoder: batched vision + merged visual projections (1 call) -----
    flat_pix = id_pixel_values.reshape(Bq * NUM_ID, -1)                    # (B*NUM_ID, 3*H*W)
    id_embeds = pallas_id_embed(flat_pix, params).reshape(Bq, NUM_ID, E)

    # ----- FuseModule + masked_scatter_, batched over prompts (1 call) -----
    ci = jnp.asarray(class_token_indices, dtype=jnp.int32)                 # traced, no retrace
    prompt_embeds = pallas_fuse_scatter(ci, prompt_embeds, id_embeds, params["fuse"])

    add_text_embeds = pooled_prompt_embeds
    added_cond_kwargs = {"text_embeds": add_text_embeds, "time_ids": add_time_ids}
    target = noise
    del prompt_embeds, added_cond_kwargs  # conditioning consumed by the real UNet
    return {"model_pred": model_pred, "target": target}


# ===================================== main =======================================
if __name__ == "__main__":
    params = init_params()

    key = jax.random.PRNGKey(0)
    k_pix, k_id, k_fwd = jax.random.split(key, 3)
    pixel_values = jax.random.normal(k_pix, (B, 3, IMG, IMG), jnp.float32)
    id_pixel_values = jax.random.normal(k_id, (B, NUM_ID, 3, ID_IMG, ID_IMG), jnp.float32)
    class_token_indices = [4, 6]                     # trigger-word positions per prompt
    original_sizes = [(IMG, IMG)] * B
    crop_top_lefts = [(0, 0)] * B

    out = photomaker_forward(params, pixel_values, id_pixel_values,
                             class_token_indices, original_sizes, crop_top_lefts, k_fwd)
    jax.block_until_ready(out)
    assert out["model_pred"].shape == (B, LAT_C, LAT_H, LAT_H)
    assert out["target"].shape == (B, LAT_C, LAT_H, LAT_H)
    print("KERNEL_OK")
</pallas_src>

<mosaic_0001>
module attributes {stable_mosaic.version = 11 : i64} {
  func.func @_latent_path_kernel(%arg0: memref<192x128xf32, #tpu.memory_space<vmem>>, %arg1: memref<4x128xf32, #tpu.memory_space<vmem>>, %arg2: memref<1x128xf32, #tpu.memory_space<vmem>>, %arg3: memref<1x128xf32, #tpu.memory_space<vmem>>, %arg4: memref<4x192xf32, #tpu.memory_space<vmem>>, %arg5: memref<4x1xf32, #tpu.memory_space<vmem>>, %arg6: memref<4x4xf32, #tpu.memory_space<vmem>>, %arg7: memref<4x1xf32, #tpu.memory_space<vmem>>, %arg8: memref<4x128xf32, #tpu.memory_space<vmem>>) attributes {dimension_semantics = [], scalar_prefetch = 0 : i64, scratch_operands = 0 : i64, tpu.core_type = #tpu.core_type<tc>} {
    %c0 = arith.constant 0 : index
    %c0_0 = arith.constant 0 : index
    %0 = vector.load %arg4[%c0, %c0_0] : memref<4x192xf32, #tpu.memory_space<vmem>>, vector<4x192xf32>
    %c0_1 = arith.constant 0 : index
    %c0_2 = arith.constant 0 : index
    %1 = vector.load %arg0[%c0_1, %c0_2] : memref<192x128xf32, #tpu.memory_space<vmem>>, vector<192x128xf32>
    %cst = arith.constant dense<0.000000e+00> : vector<4x128xf32>
    %2 = tpu.matmul %0, %1, %cst {dimension_numbers = #tpu.dot_dimension_numbers<[1], [0], [0], [1], [0, 0, 1, 1], [], []>} : vector<4x192xf32>, vector<192x128xf32>, vector<4x128xf32> -> vector<4x128xf32>
    %c0_3 = arith.constant 0 : index
    %c0_4 = arith.constant 0 : index
    %3 = vector.load %arg5[%c0_3, %c0_4] : memref<4x1xf32, #tpu.memory_space<vmem>>, vector<4x1xf32>
    %4 = vector.broadcast %3 : vector<4x1xf32> to vector<4x128xf32>
    %5 = arith.addf %2, %4 : vector<4x128xf32>
    %c0_5 = arith.constant 0 : index
    %c0_6 = arith.constant 0 : index
    %6 = vector.load %arg2[%c0_5, %c0_6] : memref<1x128xf32, #tpu.memory_space<vmem>>, vector<1x128xf32>
    %cst_7 = arith.constant 1.302500e-01 : f32
    %7 = vector.broadcast %cst_7 : f32 to vector<4x128xf32>
    %8 = arith.mulf %5, %7 : vector<4x128xf32>
    %9 = vector.broadcast %6 : vector<1x128xf32> to vector<4x128xf32>
    %10 = arith.mulf %9, %8 : vector<4x128xf32>
    %c0_8 = arith.constant 0 : index
    %c0_9 = arith.constant 0 : index
    %11 = vector.load %arg3[%c0_8, %c0_9] : memref<1x128xf32, #tpu.memory_space<vmem>>, vector<1x128xf32>
    %c0_10 = arith.constant 0 : index
    %c0_11 = arith.constant 0 : index
    %12 = vector.load %arg1[%c0_10, %c0_11] : memref<4x128xf32, #tpu.memory_space<vmem>>, vector<4x128xf32>
    %13 = vector.broadcast %11 : vector<1x128xf32> to vector<4x128xf32>
    %14 = arith.mulf %13, %12 : vector<4x128xf32>
    %15 = arith.addf %10, %14 : vector<4x128xf32>
    %c0_12 = arith.constant 0 : index
    %c0_13 = arith.constant 0 : index
    %16 = vector.load %arg7[%c0_12, %c0_13] : memref<4x1xf32, #tpu.memory_space<vmem>>, vector<4x1xf32>
    %c0_14 = arith.constant 0 : index
    %c0_15 = arith.constant 0 : index
    %17 = vector.load %arg6[%c0_14, %c0_15] : memref<4x4xf32, #tpu.memory_space<vmem>>, vector<4x4xf32>
    %18 = vector.extract_strided_slice %17 {offsets = [0, 0], sizes = [4, 1], strides = [1, 1]} : vector<4x4xf32> to vector<4x1xf32>
    %19 = vector.extract_strided_slice %15 {offsets = [0, 0], sizes = [1, 128], strides = [1, 1]} : vector<4x128xf32> to vector<1x128xf32>
    %20 = vector.broadcast %18 : vector<4x1xf32> to vector<4x128xf32>
    %21 = vector.broadcast %19 : vector<1x128xf32> to vector<4x128xf32>
    %22 = arith.mulf %20, %21 : vector<4x128xf32>
    %23 = vector.broadcast %16 : vector<4x1xf32> to vector<4x128xf32>
    %24 = arith.addf %23, %22 : vector<4x128xf32>
    %25 = vector.extract_strided_slice %17 {offsets = [0, 1], sizes = [4, 1], strides = [1, 1]} : vector<4x4xf32> to vector<4x1xf32>
    %26 = vector.extract_strided_slice %15 {offsets = [1, 0], sizes = [1, 128], strides = [1, 1]} : vector<4x128xf32> to vector<1x128xf32>
    %27 = vector.broadcast %25 : vector<4x1xf32> to vector<4x128xf32>
    %28 = vector.broadcast %26 : vector<1x128xf32> to vector<4x128xf32>
    %29 = arith.mulf %27, %28 : vector<4x128xf32>
    %30 = arith.addf %24, %29 : vector<4x128xf32>
    %31 = vector.extract_strided_slice %17 {offsets = [0, 2], sizes = [4, 1], strides = [1, 1]} : vector<4x4xf32> to vector<4x1xf32>
    %32 = vector.extract_strided_slice %15 {offsets = [2, 0], sizes = [1, 128], strides = [1, 1]} : vector<4x128xf32> to vector<1x128xf32>
    %33 = vector.broadcast %31 : vector<4x1xf32> to vector<4x128xf32>
    %34 = vector.broadcast %32 : vector<1x128xf32> to vector<4x128xf32>
    %35 = arith.mulf %33, %34 : vector<4x128xf32>
    %36 = arith.addf %30, %35 : vector<4x128xf32>
    %37 = vector.extract_strided_slice %17 {offsets = [0, 3], sizes = [4, 1], strides = [1, 1]} : vector<4x4xf32> to vector<4x1xf32>
    %38 = vector.extract_strided_slice %15 {offsets = [3, 0], sizes = [1, 128], strides = [1, 1]} : vector<4x128xf32> to vector<1x128xf32>
    %39 = vector.broadcast %37 : vector<4x1xf32> to vector<4x128xf32>
    %40 = vector.broadcast %38 : vector<1x128xf32> to vector<4x128xf32>
    %41 = arith.mulf %39, %40 : vector<4x128xf32>
    %42 = arith.addf %36, %41 : vector<4x128xf32>
    %c0_16 = arith.constant 0 : index
    %c0_17 = arith.constant 0 : index
    %43 = vector.load %arg8[%c0_16, %c0_17] : memref<4x128xf32, #tpu.memory_space<vmem>>, vector<4x128xf32>
    tpu.vector_store %arg8[%c0_16, %c0_17], %42 {strides = array<i32>} : memref<4x128xf32, #tpu.memory_space<vmem>>, vector<4x128xf32>,
    return
  }
}

</mosaic_0001>

<bundles_post_ra>
// kernel: tpu_custom_call.1
= control target key start
LH: loop header
LB: loop body
LE: loop exit
PB: predicated region body
PF: predicated region fallthrough
CT: control target
= control target key end

     0   :  { %13 = vsyncpa [#allocation3], 0  ;;  %s452_s0 = inlined_call_operand.hbm [shape: f32[192,128], index: 0, kind: input, shape index: {}]   ;;  %s453_s1 = inlined_call_operand.vmem [shape: f32[4,128], index: 1, kind: input, shape index: {}]   ;;  %s454_s2 = inlined_call_operand.vmem [shape: f32[1,128], index: 2, kind: input, shape index: {}]   ;;  %s455_s3 = inlined_call_operand.vmem [shape: f32[1,128], index: 3, kind: input, shape index: {}]   ;;  %s456_s4 = inlined_call_operand.vmem [shape: f32[4,192], index: 4, kind: input, shape index: {}]   ;;  %s457_s5 = inlined_call_operand.vmem [shape: f32[4,1], index: 5, kind: input, shape index: {}]   ;;  %s458_s6 = inlined_call_operand.vmem [shape: f32[4,4], index: 6, kind: input, shape index: {}]   ;;  %s459_s7 = inlined_call_operand.vmem [shape: f32[4,1], index: 7, kind: input, shape index: {}]   ;;  %s460_s8 = inlined_call_operand.hbm [shape: f32[4,128], index: 8, kind: output, shape index: {}]  }
   0x1   :  { %14 = vsyncpa [#allocation4], 0  ;;  %s336_s27 = smov [#allocation2]   ;;  %s288_s9 = scalar_lea.hbm %s452_s0, 3072 }
   0x2   :  { %s20_s28 = sshll.u32 %s336_s27, 4  ;;  %p289_p0 = scmp.ne.s32.totalorder %s452_s0, %s288_s9  ;;  %s21_s28 = int_to_ptr.vmem [resolvable:$true] %s20_s28 }
   0x3   :  { %p292_p1 = scmp.lt.u32.totalorder %s288_s9, %s452_s0 }
   0x5   :  { %p294_p2 = pnand %p292_p1, %p289_p0 }
   0x7   :  { %297 = shalt.err (!%p294_p2)
}
   0x8   :  { %s298_s14 = scalar_lea.vmem %s21_s28, 3072  ;;  %p303_p4 = scmp.lt.s32.totalorder %s21_s28, %s21_s28 }
   0x9   :  { %p299_p3 = scmp.ne.s32.totalorder %s21_s28, %s298_s14  ;;  %p304_p5 = scmp.lt.s32.totalorder %s298_s14, %s298_s14 }
   0xb   :  { %p305_p6 = por %p304_p5, %p303_p4 }
   0xd   :  { %p306_p7 = pnand %p305_p6, %p299_p3 }
   0xf   :  { %309 = shalt.err (!%p306_p7)
}
  0x10   :  { %s337_s15 = smov 128   ;;  %s338_s16 = smov 8  }
  0x11   :  { %26 = dma.hbm_to_vmem [thread:$0]  %s452_s0, 3072, %s21_s28, [#allocation3], %s337_s15, %s337_s15, %s338_s16  }
  0x12   :  { %332 = dma.done.wait [#allocation3], 3072  }
  0x13   :  { %333 = vsyncadd [#allocation3], 4294964224  ;;  %v339_v0 = vmov 0.0|0.0   ;;  %v340_v1 = vmov 0   ;;  %v45_v2 = vld [vmem:[#allocation2] sm:$0xff]  ;;  %v46_v3 = vld [vmem:[#allocation2 + $0x8] sm:$0xff]  ;;  %v176_v46 = vlaneseq }
  0x14   :  { %236 = vmatprep.subr.bf16.mxu0 %v339_v0  ;;  %281 = vset.pattern.permute.xlu0 %v340_v1  ;;  %v47_v4 = vld [vmem:[#allocation2 + $0x10] sm:$0xff]  ;;  %v237_v5 = vpack.c.bf16 %v46_v3, %v45_v2  ;;  %v48_v6 = vld [vmem:[#allocation2 + $0x18] sm:$0xff]  ;;  %v49_v8 = vld [vmem:[#allocation2 + $0x20] sm:$0xff]  ;;  %vm77_vm0 = vcmask 523264   ;;  %v341_v21 = vmov 1   ;;  %v342_v25 = vmov 2  }
  0x15   :  { %282 = vset.pattern.permute.xlu1 %v340_v1  ;;  %v240_v7 = vpack.c.bf16 %v48_v6, %v47_v4  ;;  %v50_v9 = vld [vmem:[#allocation2 + $0x28] sm:$0xff]  ;;  %v51_v11 = vld [vmem:[#allocation2 + $0x30] sm:$0xff]  ;;  %v52_v12 = vld [vmem:[#allocation2 + $0x38] sm:$0xff]  ;;  %v343_v26 = vmov 3   ;;  %v177_v53 = vshrl.u32 %v176_v46, 7 }
  0x16   :  { %238 = vmatpush1.bf16.msra.mxu0 %v237_v5  ;;  %v243_v10 = vpack.c.bf16 %v50_v9, %v49_v8  ;;  %v408_v13 = vld [vmem:[%s456_s4] sm:$0xff]  ;;  %v246_v18 = vpack.c.bf16 %v52_v12, %v51_v11  ;;  %v54_v20 = vld [vmem:[#allocation2 + $0x48] sm:$0xff]  ;;  %v55_v23 = vld [vmem:[#allocation2 + $0x50] sm:$0xff] }
  0x17   :  { %239 = vmatprep.subr.bf16.mxu0 %v339_v0  ;;  %v69_v14 = vld [vmem:[%s457_s5] sm:$0xf]  ;;  %v76_v16 = vcombine.high %v408_v13, %v408_v13  ;;  %v56_v24 = vld [vmem:[#allocation2 + $0x58] sm:$0xff]  ;;  %v58_v29 = vld [vmem:[#allocation2 + $0x68] sm:$0xff]  ;;  %v178_v59 = vsub.s32 0, %v177_v53  ;;  %v193_v60 = vsub.s32 1, %v177_v53 }
  0x18   :  { %v169_v15 = vld [vmem:[%s459_s7] sm:$0xf]  ;;  %72 = vperm.xlu0 %281, %v69_v14   ;;  %v252_v27 = vpack.c.bf16 %v56_v24, %v55_v23  ;;  %v59_v31 = vld [vmem:[#allocation2 + $0x70] sm:$0xff]  ;;  %v60_v32 = vld [vmem:[#allocation2 + $0x78] sm:$0xff]  ;;  %v203_v62 = vsub.s32 2, %v177_v53  ;;  %v213_v3 = vsub.s32 3, %v177_v53 }
  0x19   :  { %183 = vperm.xlu1 %282, %v169_v15   ;;  %v170_v17 = vld [vmem:[%s458_s6] sm:$0xf]  ;;  %233 = vmatprep.mubr.msk.f32.mxu0 %vm77_vm0, %v76_v16  ;;  %v258_v33 = vpack.c.bf16 %v60_v32, %v59_v31  ;;  %v62_v35 = vld [vmem:[#allocation2 + $0x88] sm:$0xff]  ;;  %v63_v37 = vld [vmem:[#allocation2 + $0x90] sm:$0xff] }
  0x1a   :  { %241 = vmatpush1.bf16.msra.mxu0 %v240_v7  ;;  %v53_v19 = vld [vmem:[#allocation2 + $0x40] sm:$0xff]  ;;  %v64_v38 = vld [vmem:[#allocation2 + $0x98] sm:$0xff]  ;;  %v66_v41 = vld [vmem:[#allocation2 + $0xa8] sm:$0xff] }
  0x1b   :  { %242 = vmatprep.subr.bf16.mxu0 %v339_v0  ;;  %v249_v22 = vpack.c.bf16 %v54_v20, %v53_v19  ;;  %v57_v28 = vld [vmem:[#allocation2 + $0x60] sm:$0xff]  ;;  %v264_v39 = vpack.c.bf16 %v64_v38, %v63_v37  ;;  %v67_v43 = vld [vmem:[#allocation2 + $0xb0] sm:$0xff]  ;;  %v68_v44 = vld [vmem:[#allocation2 + $0xb8] sm:$0xff] }
  0x1c   :  { %173 = vperm.xlu0 %281, %v170_v17   ;;  %v255_v30 = vpack.c.bf16 %v58_v29, %v57_v28  ;;  %v61_v34 = vld [vmem:[#allocation2 + $0x80] sm:$0xff]  ;;  %v270_v45 = vpack.c.bf16 %v68_v44, %v67_v43 }
  0x1d   :  { %283 = vset.pattern.permute.xlu1 %v341_v21  ;;  %v261_v36 = vpack.c.bf16 %v62_v35, %v61_v34  ;;  %v65_v40 = vld [vmem:[#allocation2 + $0xa0] sm:$0xff] }
  0x1e   :  { %244 = vmatpush1.bf16.msra.mxu0 %v243_v10  ;;  %188 = vperm.xlu1 %283, %v170_v17   ;;  %v267_v42 = vpack.c.bf16 %v66_v41, %v65_v40  ;;  %v235_v49 = vld [vmem:[%s455_s3] ss:$0 sm:$0xff] }
  0x1f   :  { %245 = vmatprep.subr.bf16.mxu0 %v339_v0  ;;  %v160_v50 = vld [vmem:[%s453_s1] sm:$0xf]  ;;  %s344_s1 = smov [#allocation5]  }
  0x20   :  { %284 = vset.pattern.permute.xlu0 %v342_v25  ;;  %v234_v54 = vld [vmem:[%s454_s2] ss:$0 sm:$0xff]  ;;  %v167_v57 = vmul.f32 %v235_v49, %v160_v50  ;;  %s224_s2 = sshll.u32 %s344_s1, 4  ;;  %s225_s2 = int_to_ptr.vmem [resolvable:$true] %s224_s2 }
  0x21   :  { %198 = vperm.xlu0 %284, %v170_v17   ;;  %s310_s3 = scalar_lea.vmem %s225_s2, 64  ;;  %p315_p9 = scmp.lt.s32.totalorder %s225_s2, %s225_s2 }
  0x22   :  { %247 = vmatpush1.bf16.msra.mxu0 %v246_v18  ;;  %285 = vset.pattern.permute.xlu1 %v343_v26  ;;  %p311_p8 = scmp.ne.s32.totalorder %s225_s2, %s310_s3  ;;  %p316_p10 = scmp.lt.s32.totalorder %s310_s3, %s310_s3 }
  0x23   :  { %248 = vmatprep.subr.bf16.mxu0 %v339_v0  ;;  %208 = vperm.xlu1 %285, %v170_v17  }
  0x24   :  { %p317_p11 = por %p316_p10, %p315_p9 }
  0x25   :  { %286 = vset.pattern.permute.xlu0 %v343_v26 }
  0x26   :  { %250 = vmatpush1.bf16.msra.mxu0 %v249_v22  ;;  %p318_p12 = pnand %p317_p11, %p311_p8 }
  0x27   :  { %251 = vmatprep.subr.bf16.mxu0 %v339_v0 }
  0x2a   :  { %253 = vmatpush1.bf16.msra.mxu0 %v252_v27 }
  0x2b   :  { %254 = vmatprep.subr.bf16.mxu0 %v339_v0 }
  0x2e   :  { %256 = vmatpush1.bf16.msra.mxu0 %v255_v30 }
  0x2f   :  { %257 = vmatprep.subr.bf16.mxu0 %v339_v0 }
  0x32   :  { %259 = vmatpush1.bf16.msra.mxu0 %v258_v33 }
  0x33   :  { %260 = vmatprep.subr.bf16.mxu0 %v339_v0 }
  0x36   :  { %262 = vmatpush1.bf16.msra.mxu0 %v261_v36 }
  0x37   :  { %263 = vmatprep.subr.bf16.mxu0 %v339_v0 }
  0x3a   :  { %265 = vmatpush1.bf16.msra.mxu0 %v264_v39 }
  0x3b   :  { %266 = vmatprep.subr.bf16.mxu0 %v339_v0 }
  0x3e   :  { %268 = vmatpush1.bf16.msra.mxu0 %v267_v42 }
  0x3f   :  { %269 = vmatprep.subr.bf16.mxu0 %v339_v0 }
  0x42   :  { %271 = vmatpush1.bf16.msra.mxu0 %v270_v45 }
  0x45   :  { %145 = vmatmul.mubr.f32.vlgmr.msra.gmra.mrb[0].mxu0 %v408_v13 }
  0x97   :  { %v73_v47 = vpop.permute.xlu0 %72 }
  0x98   :  { %v184_v55 = vpop.permute.xlu1 %183 }
  0x9b   :  { %v174_v63 = vpop.permute.xlu0 %173 }
  0x9d   :  { %v189_v0 = vpop.permute.xlu1 %188 }
  0xa0   :  { %v199_v6 = vpop.permute.xlu0 %198 }
  0xa2   :  { %v209_v10 = vpop.permute.xlu1 %208 }
 0x118   :  { %v146_v48 = vpop.f32.mrb[0].mxu0 }
 0x119   :  { %v147_v51 = vadd.f32 %v146_v48, %v73_v47  ;;  %v148_v52 = vpop.f32.mrb[1].mxu0 }
 0x11b   :  { %v151_v56 = vmul.f32 0.13025, %v147_v51 }
 0x11d   :  { %v158_v58 = vmul.f32 %v234_v54, %v151_v56 }
 0x11f   :  { %v168_v61 = vadd.f32 %v167_v57, %v158_v58 }
 0x121   :  { %v179_v1 = vrot.slane %v168_v61, %v178_v59  ;;  %v194_v2 = vrot.slane %v168_v61, %v193_v60  ;;  %v204_v5 = vrot.slane %v168_v61, %v203_v62  ;;  %v214_v9 = vrot.slane %v168_v61, %v213_v3 }
 0x123   :  { %v180_v4 = vmul.f32 %v179_v1, %v174_v63  ;;  %v195_v8 = vmul.f32 %v194_v2, %v189_v0  ;;  %v205_v12 = vmul.f32 %v204_v5, %v199_v6  ;;  %v215_v13 = vmul.f32 %v214_v9, %v209_v10 }
 0x125   :  { %v186_v7 = vadd.f32 %v184_v55, %v180_v4 }
 0x127   :  { %v196_v11 = vadd.f32 %v195_v8, %v186_v7 }
 0x129   :  { %v206_v14 = vadd.f32 %v205_v12, %v196_v11 }
 0x12b   :  { %v216_v15 = vadd.f32 %v215_v13, %v206_v14 }
 0x12d   :  { %217 = vst [vmem:[#allocation5] sm:$0xf] %v216_v15 }
 0x12e   :  { %321 = shalt.err (!%p318_p12)
}
 0x12f   :  { %s322_s30 = scalar_lea.hbm %s460_s8, 64 }
 0x130   :  { %p323_p13 = scmp.ne.s32.totalorder %s460_s8, %s322_s30  ;;  %p326_p0 = scmp.lt.u32.totalorder %s322_s30, %s460_s8 }
 0x132   :  { %p328_p1 = pnand %p326_p0, %p323_p13 }
 0x134   :  { %331 = shalt.err (!%p328_p1)
}
 0x135   :  { %227 = dma.vmem_to_hbm [thread:$0]  %s225_s2, 64, %s460_s8, [#allocation4]  }
 0x136   :  { %334 = dma.done.wait [#allocation4], 64  }
 0x137   :  { %335 = vsyncadd [#allocation4], 4294967232 }
 0x138   :  { %231 = vsyncpa [#allocation3], 1 }
 0x139   :  { %232 = vsyncpa [#allocation4], 1 }

</bundles_post_ra>
